<compile_context>
chip_gen: v7x
topology: tpu7x:2x2x1
jax: 0.10.0
libtpu: 0.0.40
codegen_flags: <defaults>
</compile_context>

<pallas_src>
import functools

import jax
import jax.numpy as jnp
from jax.experimental import pallas as pl
from jax.experimental.pallas import tpu as pltpu


def _mase_kernel(insample_ref, forecast_ref, target_ref, mask_ref, out_ref, *, freq):
    """One batch tile per grid step; writes a lane-dense per-tile partial sum.

    partial = sum_rows( inv_masep_row * sum_t |target - forecast| * mask )
    with inv_masep_row = 1/masep if masep > 0 else 0 (== divide_no_nan, since
    masep >= 0 and mask >= 0).  The wrapper sums partials and divides by B*T_o.
    """
    ins = insample_ref[...].astype(jnp.float32)                     # (TB, T_i)
    t_i = ins.shape[-1]

    # Seasonal-naive in-sample error (freq is a static Python int, so these are
    # static slices): diff[:, j] = |ins[:, j + freq] - ins[:, j]|.
    diff = jnp.abs(ins[:, freq:] - ins[:, : t_i - freq])            # (TB, T_i - freq)
    masep = jnp.sum(diff, axis=1, keepdims=True) * (1.0 / float(t_i - freq))  # (TB,1)

    # divide_no_nan(mask, masep) folded into a per-row reciprocal on (TB, 1).
    inv = jnp.where(masep > 0.0, 1.0 / masep, 0.0)                  # (TB, 1)

    err = jnp.abs(target_ref[...].astype(jnp.float32)
                  - forecast_ref[...].astype(jnp.float32))          # (TB, T_o)
    s = jnp.sum(err * mask_ref[...].astype(jnp.float32),
                axis=1, keepdims=True)                              # (TB, 1)

    partial = jnp.sum(s * inv, axis=0, keepdims=True)               # (1, 1)
    out_ref[...] = jnp.broadcast_to(jnp.reshape(partial, (1, 1, 1)), out_ref.shape)


def _pick_batch_tile(batch, in_row_bytes, f32_row_bytes, budget_bytes=16 * 1024 * 1024):
    """Largest multiple-of-8 batch tile keeping live VMEM (2x double-buffered
    inputs + f32 working copies) under ~16 MiB (safe on v7x's 64 MiB VMEM)."""
    per_row_live = 2 * in_row_bytes + 2 * f32_row_bytes
    tile = budget_bytes // max(per_row_live, 1)
    tile = (int(tile) // 8) * 8
    tile = max(8, min(tile, 1024))
    if batch <= tile:
        tile = max(8, -(-batch // 8) * 8)   # single tile, rounded up to 8 rows
    return int(tile)


def mase_loss(insample, freq, forecast, target, mask, *, batch_tile=None):
    """insample: (B, T_i); forecast/target/mask: (B, T_o); freq: static int."""
    insample = jnp.asarray(insample)
    forecast = jnp.asarray(forecast)
    target = jnp.asarray(target)
    mask = jnp.asarray(mask)
    freq = int(freq)

    B, t_i = insample.shape
    _, t_o = forecast.shape
    if not (0 < freq < t_i):
        raise ValueError(f"freq must satisfy 0 < freq < T_i, got {freq} vs {t_i}")

    if batch_tile is None:
        in_row_bytes = (t_i * insample.dtype.itemsize
                        + t_o * (forecast.dtype.itemsize
                                 + target.dtype.itemsize
                                 + mask.dtype.itemsize))
        f32_row_bytes = 4 * (t_i + 3 * t_o)
        batch_tile = _pick_batch_tile(B, in_row_bytes, f32_row_bytes)

    # Pad batch to a multiple of the tile: zero rows have masep == 0 -> inv == 0,
    # so they contribute exactly 0 to the accumulated sum.
    b_pad = -(-B // batch_tile) * batch_tile
    if b_pad != B:
        pad = b_pad - B
        insample = jnp.pad(insample, ((0, pad), (0, 0)))
        forecast = jnp.pad(forecast, ((0, pad), (0, 0)))
        target = jnp.pad(target, ((0, pad), (0, 0)))
        mask = jnp.pad(mask, ((0, pad), (0, 0)))
    num_tiles = b_pad // batch_tile

    kernel = functools.partial(_mase_kernel, freq=freq)

    flops = 5 * b_pad * t_i + 4 * b_pad * t_o
    bytes_accessed = (insample.size * insample.dtype.itemsize
                      + forecast.size * forecast.dtype.itemsize
                      + target.size * target.dtype.itemsize
                      + mask.size * mask.dtype.itemsize
                      + num_tiles * 8 * 128 * 4)

    partials = pl.pallas_call(
        kernel,
        out_shape=jax.ShapeDtypeStruct((num_tiles, 8, 128), jnp.float32),
        grid=(num_tiles,),
        in_specs=[
            pl.BlockSpec((batch_tile, t_i), lambda i: (i, 0)),
            pl.BlockSpec((batch_tile, t_o), lambda i: (i, 0)),
            pl.BlockSpec((batch_tile, t_o), lambda i: (i, 0)),
            pl.BlockSpec((batch_tile, t_o), lambda i: (i, 0)),
        ],
        out_specs=pl.BlockSpec((1, 8, 128), lambda i: (i, 0, 0)),
        compiler_params=pltpu.CompilerParams(
            dimension_semantics=("parallel",),
            vmem_limit_bytes=32 * 1024 * 1024,
        ),
        cost_estimate=pl.CostEstimate(
            flops=flops, transcendentals=0, bytes_accessed=bytes_accessed),
    )(insample, forecast, target, mask)

    # Final mean over the ORIGINAL (unpadded) element count.
    return jnp.sum(partials[:, 0, 0]) / (B * t_o)


def _mase_ref(insample, freq, forecast, target, mask):
    """Pure-JAX reference (mirrors the PyTorch module)."""
    masep = jnp.mean(jnp.abs(insample[:, freq:] - insample[:, :-freq]),
                     axis=1, keepdims=True)
    r = mask / masep
    r = jnp.where(jnp.isnan(r), 0.0, r)
    r = jnp.where(r == jnp.inf, 0.0, r)
    return jnp.mean(jnp.abs(target - forecast) * r)


if __name__ == "__main__":
    key = jax.random.PRNGKey(0)
    k1, k2, k3, k4 = jax.random.split(key, 4)

    # B=20 with batch_tile=8 exercises multi-tile grid (3 tiles) and zero padding.
    B, T_I, T_O, FREQ = 20, 128, 128, 2

    insample = jax.random.normal(k1, (B, T_I), dtype=jnp.float32)
    # one constant row -> masep == 0 -> exercises divide_no_nan path
    insample = insample.at[0].set(1.0)
    forecast = jax.random.normal(k2, (B, T_O), dtype=jnp.float32)
    target = jax.random.normal(k3, (B, T_O), dtype=jnp.float32)
    mask = (jax.random.uniform(k4, (B, T_O)) > 0.3).astype(jnp.float32)

    out = mase_loss(insample, FREQ, forecast, target, mask, batch_tile=8)
    out = jax.block_until_ready(out)

    ref = _mase_ref(insample, FREQ, forecast, target, mask)
    assert jnp.allclose(out, ref, rtol=1e-5, atol=1e-6), (out, ref)

    print("KERNEL_OK")
</pallas_src>

<mosaic_0001>
module attributes {stable_mosaic.version = 11 : i64} {
  func.func @_mase_kernel(%arg0: i32, %arg1: memref<8x128xf32, #tpu.memory_space<vmem>>, %arg2: memref<8x128xf32, #tpu.memory_space<vmem>>, %arg3: memref<8x128xf32, #tpu.memory_space<vmem>>, %arg4: memref<8x128xf32, #tpu.memory_space<vmem>>, %arg5: memref<1x8x128xf32, #tpu.memory_space<vmem>>) attributes {dimension_semantics = [#tpu.dimension_semantics<parallel>], iteration_bounds = array<i64: 3>, scalar_prefetch = 0 : i64, scratch_operands = 0 : i64, tpu.core_type = #tpu.core_type<tc>, window_params = [{transform_indices = @transform_0, window_bounds = array<i64: 8, 128>}, {transform_indices = @transform_1, window_bounds = array<i64: 8, 128>}, {transform_indices = @transform_2, window_bounds = array<i64: 8, 128>}, {transform_indices = @transform_3, window_bounds = array<i64: 8, 128>}, {transform_indices = @transform_4, window_bounds = array<i64: 1, 8, 128>}]} {
    %c0 = arith.constant 0 : index
    %c0_0 = arith.constant 0 : index
    %0 = vector.load %arg1[%c0, %c0_0] : memref<8x128xf32, #tpu.memory_space<vmem>>, vector<8x128xf32>
    %1 = vector.extract_strided_slice %0 {offsets = [0, 2], sizes = [8, 126], strides = [1, 1]} : vector<8x128xf32> to vector<8x126xf32>
    %2 = vector.extract_strided_slice %0 {offsets = [0, 0], sizes = [8, 126], strides = [1, 1]} : vector<8x128xf32> to vector<8x126xf32>
    %3 = arith.subf %1, %2 : vector<8x126xf32>
    %4 = math.absf %3 : vector<8x126xf32>
    %cst = arith.constant dense<0.000000e+00> : vector<8xf32>
    %5 = vector.multi_reduction <add>, %4, %cst [1] : vector<8x126xf32> to vector<8xf32>
    %6 = vector.shape_cast %5 : vector<8xf32> to vector<8x1xf32>
    %cst_1 = arith.constant 0.00793650839 : f32
    %7 = vector.broadcast %cst_1 : f32 to vector<8x1xf32>
    %8 = arith.mulf %6, %7 : vector<8x1xf32>
    %cst_2 = arith.constant 0.000000e+00 : f32
    %9 = vector.broadcast %cst_2 : f32 to vector<8x1xf32>
    %10 = arith.cmpf ogt, %8, %9 : vector<8x1xf32>
    %cst_3 = arith.constant 1.000000e+00 : f32
    %11 = vector.broadcast %cst_3 : f32 to vector<8x1xf32>
    %12 = arith.divf %11, %8 : vector<8x1xf32>
    %cst_4 = arith.constant 0.000000e+00 : f32
    %13 = vector.broadcast %cst_4 : f32 to vector<8x1xf32>
    %14 = arith.select %10, %12, %13 : vector<8x1xi1>, vector<8x1xf32>
    %c0_5 = arith.constant 0 : index
    %c0_6 = arith.constant 0 : index
    %15 = vector.load %arg3[%c0_5, %c0_6] : memref<8x128xf32, #tpu.memory_space<vmem>>, vector<8x128xf32>
    %c0_7 = arith.constant 0 : index
    %c0_8 = arith.constant 0 : index
    %16 = vector.load %arg2[%c0_7, %c0_8] : memref<8x128xf32, #tpu.memory_space<vmem>>, vector<8x128xf32>
    %17 = arith.subf %15, %16 : vector<8x128xf32>
    %18 = math.absf %17 : vector<8x128xf32>
    %c0_9 = arith.constant 0 : index
    %c0_10 = arith.constant 0 : index
    %19 = vector.load %arg4[%c0_9, %c0_10] : memref<8x128xf32, #tpu.memory_space<vmem>>, vector<8x128xf32>
    %20 = arith.mulf %18, %19 : vector<8x128xf32>
    %cst_11 = arith.constant dense<0.000000e+00> : vector<8xf32>
    %21 = vector.multi_reduction <add>, %20, %cst_11 [1] : vector<8x128xf32> to vector<8xf32>
    %22 = vector.shape_cast %21 : vector<8xf32> to vector<8x1xf32>
    %23 = arith.mulf %22, %14 : vector<8x1xf32>
    %cst_12 = arith.constant dense<0.000000e+00> : vector<1xf32>
    %24 = vector.multi_reduction <add>, %23, %cst_12 [0] : vector<8x1xf32> to vector<1xf32>
    %25 = vector.shape_cast %24 : vector<1xf32> to vector<1x1xf32>
    %26 = vector.shape_cast %25 : vector<1x1xf32> to vector<1x1x1xf32>
    %27 = vector.shape_cast %26 : vector<1x1x1xf32> to vector<1x1x1xf32>
    %28 = vector.broadcast %27 : vector<1x1x1xf32> to vector<1x8x128xf32>
    %c0_13 = arith.constant 0 : index
    %c0_14 = arith.constant 0 : index
    %c0_15 = arith.constant 0 : index
    %29 = vector.load %arg5[%c0_13, %c0_14, %c0_15] : memref<1x8x128xf32, #tpu.memory_space<vmem>>, vector<1x8x128xf32>
    tpu.vector_store %arg5[%c0_13, %c0_14, %c0_15], %28 {strides = array<i32>} : memref<1x8x128xf32, #tpu.memory_space<vmem>>, vector<1x8x128xf32>,
    return
  }
  func.func @transform_0(%arg0: i32) -> (i32, i32) {
    %c0_i32 = arith.constant 0 : i32
    %c0_i32_0 = arith.constant 0 : i32
    return %arg0, %c0_i32 : i32, i32
  }
  func.func @transform_1(%arg0: i32) -> (i32, i32) {
    %c0_i32 = arith.constant 0 : i32
    %c0_i32_0 = arith.constant 0 : i32
    return %arg0, %c0_i32 : i32, i32
  }
  func.func @transform_2(%arg0: i32) -> (i32, i32) {
    %c0_i32 = arith.constant 0 : i32
    %c0_i32_0 = arith.constant 0 : i32
    return %arg0, %c0_i32 : i32, i32
  }
  func.func @transform_3(%arg0: i32) -> (i32, i32) {
    %c0_i32 = arith.constant 0 : i32
    %c0_i32_0 = arith.constant 0 : i32
    return %arg0, %c0_i32 : i32, i32
  }
  func.func @transform_4(%arg0: i32) -> (i32, i32, i32) {
    %c0_i32 = arith.constant 0 : i32
    %c0_i32_0 = arith.constant 0 : i32
    %c0_i32_1 = arith.constant 0 : i32
    return %arg0, %c0_i32, %c0_i32_0 : i32, i32, i32
  }
}

</mosaic_0001>

<bundles_post_ra>
// kernel: tpu_custom_call.1
= control target key start
LH: loop header
LB: loop body
LE: loop exit
PB: predicated region body
PF: predicated region fallthrough
CT: control target
= control target key end

     0   :  { %s1085_s0 = inlined_call_operand.hbm [shape: f32[24,128], index: 0, kind: input, shape index: {}]   ;;  %s1086_s1 = inlined_call_operand.hbm [shape: f32[24,128], index: 1, kind: input, shape index: {}]   ;;  %s1087_s2 = inlined_call_operand.hbm [shape: f32[24,128], index: 2, kind: input, shape index: {}]   ;;  %s1088_s3 = inlined_call_operand.hbm [shape: f32[24,128], index: 3, kind: input, shape index: {}]   ;;  %s1089_s4 = inlined_call_operand.hbm [shape: f32[3,8,128], index: 4, kind: output, shape index: {}]  }
   0x1   :  { %1095 = sst [smem:[#allocation17_spill]] %s1086_s1 }
   0x2   :  { %9 = vsyncpa [#allocation3], 0 }
   0x3   :  { %11 = vsyncpa [#allocation3 + $0x1], 0 }
   0x4   :  { %12 = vsyncpa [#allocation6], 0 }
   0x5   :  { %14 = vsyncpa [#allocation6 + $0x1], 0 }
   0x6   :  { %15 = vsyncpa [#allocation9], 0 }
   0x7   :  { %17 = vsyncpa [#allocation9 + $0x1], 0 }
   0x8   :  { %18 = vsyncpa [#allocation4], 0 }
   0x9   :  { %20 = vsyncpa [#allocation4 + $0x1], 0  ;;  %s821_s15 = smov 0   ;;  %s823_s16 = smov 0  }
   0xa   :  { %s825_s17 = smov 0   ;;  %s827_s18 = smov 0  }
   0xb LB: > { %1096 = sst [smem:[#allocation15_spill]] %s783_s17  ;;  %s842_s19 = sadd.s32 4294967295, %s787_s18   ;;  %s787_s18 = sphi %s827_s18, %s1117_s18   ;;  %s783_s17 = sphi %s825_s17, %s1114_s17   ;;  %s779_s16 = sphi %s823_s16, %s1116_s16   ;;  %s775_s15 = sphi %s821_s15, %s1115_s15  }
   0xc   : > { %s507_s20 = sadd.s32 4294967294, %s787_s18   ;;  %s846_s21 = sadd.s32 1, %s787_s18  }
   0xd   : > { %s33_s22 = sadd.s32 1, %s783_s17  ;;  %s30_s23 = ssub.s32 %s787_s18, %s846_s21 }
   0xe   : > { %p40_p0 = scmp.ne.s32.totalorder %s783_s17, %s779_s16  ;;  %p31_p1 = scmp.eq.s32.totalorder %s30_s23, 0 }
   0xf   : > { %p41_p2 = scmp.eq.s32.totalorder %s787_s18, 0  ;;  %p46_p3 = scmp.ne.s32.totalorder %s779_s16, %s775_s15 }
  0x10   : > { %p47_p4 = scmp.eq.s32.totalorder %s842_s19, 0  ;;  %p148_p7 = scmp.eq.s32.totalorder %s842_s19, 2 }
  0x11   : > { %s858_s24 = scalar_select %p31_p1, %s783_s17, %s33_s22  }
  0x12   : > { %p42_p5 = por %p41_p2, %p40_p0  ;;  %p860_p6 = por %p47_p4, %p46_p3 }
  0x13   : > { %1097 = sst [smem:[#allocation16_spill]] %s858_s24  ;;  %p154_p8 = scmp.eq.s32.totalorder %s507_s20, 2 }
  0x14   : > { %s1098_s25 = scalar_select %p860_p6, 1, 0 }
  0x15   : > { %p555_p9 = scmp.lt.s32.totalorder %s787_s18, 3  ;;  %p866_p10 = por %p148_p7, %p40_p0 }
  0x16   : > { %p870_p11 = por %p154_p8, %p46_p3  ;;  %s875_s28 = sand.u32 1, %s783_s17  }
  0x17   : > { %s1099_s26 = scalar_select %p866_p10, 1, 0 }
  0x18   : > { %s1100_s27 = scalar_select %p870_p11, 1, 0 }
  0x19   : > { %s878_s29 = sshll.u32 %s787_s18, 7  ;;  %s881_s30 = sshll.u32 %s875_s28, 3 }
  0x1a   : > { %p883_p12 = pnand %p555_p9, %p42_p5  ;;  %s192_s6 = sand.u32 1, %s787_s18  }
  0x1b   : > { %s1102_s1 = sld [smem:[#allocation17_spill]]  ;;  %s196_s10 = scalar_lea.vmem [#allocation5], %s881_s30 }
  0x1c   : > { %s1101_s5 = scalar_select %p883_p12, 1, 0 }
  0x1d   : > { %s203_s11 = sshll.u32 %s196_s10, 4  ;;  %s898_s12 = scalar_lea.sflag [#allocation6], %s192_s6  ;;  %s895_s11 = int_to_ptr.vmem [resolvable:$true] %s203_s11 }
  0x1e   : > { %p904_p1 = pneg %p883_p12 }
  0x21   : > { %s892_s9 = scalar_lea.hbm %s1102_s1, %s878_s29  ;;  %s598_s23 = scalar_lea.hbm %s1102_s1, 384 }
  0x22   : > { %s593_s13 = scalar_lea.hbm %s892_s9, 128  ;;  %p599_p4 = scmp.lt.u32.totalorder %s892_s9, %s1102_s1 }
  0x23   : > { %p594_p0 = scmp.ne.s32.totalorder %s892_s9, %s593_s13  ;;  %p600_p5 = scmp.lt.u32.totalorder %s598_s23, %s593_s13 }
  0x24   : > { %p602_p8 = scmp.lt.u32.totalorder %s593_s13, %s892_s9 }
  0x25   : > { %p596_p2 = pnand %p904_p1, %p594_p0  ;;  %p601_p7 = por %p600_p5, %p599_p4 }
  0x27   : > { %p597_p3 = pneg %p596_p2  ;;  %p603_p9 = por %p602_p8, %p601_p7 }
  0x29   : > { %p604_p13 = pnand %p603_p9, %p597_p3 }
  0x2b   : > { %607 = shalt.err (!%p604_p13)
}
  0x2c   : > { %s608_s6 = scalar_lea.vmem %s895_s11, 128  ;;  %s789_s10 = smov [#allocation5]  }
  0x2d   : > { %p609_p0 = scmp.ne.s32.totalorder %s895_s11, %s608_s6  ;;  %s613_s20 = sshll.u32 %s789_s10, 4  ;;  %s614_s20 = int_to_ptr.vmem [resolvable:$false] %s613_s20 }
  0x2e   : > { %s615_s22 = scalar_lea.vmem %s614_s20, 256  ;;  %p616_p10 = scmp.lt.s32.totalorder %s895_s11, %s614_s20 }
  0x2f   : > { %p611_p2 = pnand %p609_p0, %p904_p1  ;;  %p617_p6 = scmp.lt.s32.totalorder %s615_s22, %s608_s6 }
  0x31   : > { %p612_p11 = pneg %p611_p2  ;;  %p618_p4 = por %p617_p6, %p616_p10 }
  0x33   : > { %p619_p5 = pnand %p618_p4, %p612_p11 }
  0x35   : > { %622 = shalt.err (!%p619_p5)
}
  0x36   : > { %544 = dma.hbm_to_vmem [thread:$0]  (!%p883_p12), %s892_s9, 128, %s895_s11, %s898_s12  }
  0x37   : > { %p244_p13 = scmp.lt.s32.totalorder %s787_s18, 4  ;;  %s933_s7 = scalar_lea.hbm %s1085_s0, %s878_s29 }
  0x38   : > { %p1104_p6 = scmp.ge.s32.totalorder %s787_s18, 1  ;;  %s178_s6 = scalar_lea.vmem [#allocation2], %s881_s30 }
  0x39   : > { %s185_s10 = sshll.u32 %s178_s6, 4  ;;  %s175_s20 = scalar_lea.sflag [#allocation3], %s875_s28  ;;  %s186_s10 = int_to_ptr.vmem [resolvable:$true] %s185_s10 }
  0x3a   : > { %p937_p10 = pnand %p1104_p6, %p244_p13  ;;  %s623_s9 = scalar_lea.hbm %s933_s7, 128 }
  0x3b   : > { %p624_p11 = scmp.ne.s32.totalorder %s933_s7, %s623_s9  ;;  %s628_s13 = scalar_lea.hbm %s1085_s0, 384 }
  0x3c   : > { %s1105_s8 = scalar_select %p937_p10, 1, 0 }
  0x3d   : > { %p626_p3 = pnand %p624_p11, %p904_p1  ;;  %p629_p8 = scmp.lt.u32.totalorder %s933_s7, %s1085_s0 }
  0x3e   : > { %p630_p9 = scmp.lt.u32.totalorder %s628_s13, %s623_s9  ;;  %p632_p2 = scmp.lt.u32.totalorder %s623_s9, %s933_s7 }
  0x3f   : > { %p627_p7 = pneg %p626_p3 }
  0x40   : > { %p631_p0 = por %p630_p9, %p629_p8 }
  0x42   : > { %p633_p4 = por %p632_p2, %p631_p0 }
  0x44   : > { %p634_p5 = pnand %p633_p4, %p627_p7 }
  0x46   : > { %637 = shalt.err (!%p634_p5)
}
  0x47   : > { %s638_s6 = scalar_lea.vmem %s186_s10, 128  ;;  %s790_s24 = smov [#allocation2]  }
  0x48   : > { %p639_p13 = scmp.ne.s32.totalorder %s186_s10, %s638_s6  ;;  %s643_s17 = sshll.u32 %s790_s24, 4  ;;  %s644_s17 = int_to_ptr.vmem [resolvable:$false] %s643_s17 }
  0x49   : > { %s645_s11 = scalar_lea.vmem %s644_s17, 256  ;;  %p646_p3 = scmp.lt.s32.totalorder %s186_s10, %s644_s17 }
  0x4a   : > { %p641_p6 = pnand %p639_p13, %p904_p1  ;;  %p647_p10 = scmp.lt.s32.totalorder %s645_s11, %s638_s6 }
  0x4c   : > { %p642_p11 = pneg %p641_p6  ;;  %p648_p12 = por %p647_p10, %p646_p3 }
  0x4e   : > { %p649_p8 = pnand %p648_p12, %p642_p11 }
  0x50   : > { %652 = shalt.err (!%p649_p8)
}
  0x51   : > { %p1106_p9 = scmp.ne.s32.totalorder %s1101_s5, 0  ;;  %s964_s22 = scalar_lea.hbm %s1087_s2, %s878_s29 }
  0x52   : > { %s214_s17 = scalar_lea.vmem [#allocation7], %s881_s30  ;;  %s653_s13 = scalar_lea.hbm %s964_s22, 128 }
  0x53   : > { %541 = dma.hbm_to_vmem [thread:$0]  (!%p1106_p9), %s933_s7, 128, %s186_s10, %s175_s20  }
  0x54   : > { %s221_s24 = sshll.u32 %s214_s17, 4  ;;  %p654_p12 = scmp.ne.s32.totalorder %s964_s22, %s653_s13  ;;  %s222_s24 = int_to_ptr.vmem [resolvable:$true] %s221_s24 }
  0x55   : > { %s658_s7 = scalar_lea.hbm %s1087_s2, 384  ;;  %p659_p0 = scmp.lt.u32.totalorder %s964_s22, %s1087_s2 }
  0x56   : > { %p656_p10 = pnand %p654_p12, %p904_p1  ;;  %p660_p2 = scmp.lt.u32.totalorder %s658_s7, %s653_s13 }
  0x57   : > { %p662_p5 = scmp.lt.u32.totalorder %s653_s13, %s964_s22 }
  0x58   : > { %p657_p7 = pneg %p656_p10  ;;  %p661_p4 = por %p660_p2, %p659_p0 }
  0x5a   : > { %p663_p13 = por %p662_p5, %p661_p4 }
  0x5c   : > { %p664_p6 = pnand %p663_p13, %p657_p7 }
  0x5e   : > { %667 = shalt.err (!%p664_p6)
}
  0x5f   : > { %s668_s11 = scalar_lea.vmem %s222_s24, 128  ;;  %s791_s1 = smov [#allocation7]  }
  0x60   : > { %p669_p11 = scmp.ne.s32.totalorder %s222_s24, %s668_s11  ;;  %s673_s9 = sshll.u32 %s791_s1, 4  ;;  %s674_s9 = int_to_ptr.vmem [resolvable:$false] %s673_s9 }
  0x61   : > { %s675_s17 = scalar_lea.vmem %s674_s9, 256  ;;  %p676_p12 = scmp.lt.s32.totalorder %s222_s24, %s674_s9 }
  0x62   : > { %p671_p3 = pnand %p669_p11, %p904_p1  ;;  %p677_p10 = scmp.lt.s32.totalorder %s675_s17, %s668_s11 }
  0x64   : > { %p672_p8 = pneg %p671_p3  ;;  %p678_p9 = por %p677_p10, %p676_p12 }
  0x66   : > { %p679_p0 = pnand %p678_p9, %p672_p8 }
  0x68   : > { %682 = shalt.err (!%p679_p0)
}
  0x69   : > { %p1107_p2 = scmp.ne.s32.totalorder %s1101_s5, 0  ;;  %s989_s6 = scalar_lea.hbm %s1088_s3, %s878_s29 }
  0x6a   : > { %s232_s7 = scalar_lea.vmem [#allocation8], %s881_s30  ;;  %s229_s20 = scalar_lea.sflag [#allocation9], %s875_s28 }
  0x6b   : > { %547 = dma.hbm_to_vmem [thread:$0]  (!%p1107_p2), %s964_s22, 128, %s222_s24, %s898_s12  }
  0x6c   : > { %s239_s10 = sshll.u32 %s232_s7, 4  ;;  %s683_s11 = scalar_lea.hbm %s989_s6, 128  ;;  %s240_s10 = int_to_ptr.vmem [resolvable:$true] %s239_s10 }
  0x6d   : > { %p684_p9 = scmp.ne.s32.totalorder %s989_s6, %s683_s11  ;;  %s688_s22 = scalar_lea.hbm %s1088_s3, 384 }
  0x6e   : > { %p689_p5 = scmp.lt.u32.totalorder %s989_s6, %s1088_s3  ;;  %p690_p13 = scmp.lt.u32.totalorder %s688_s22, %s683_s11 }
  0x6f   : > { %p686_p7 = pnand %p684_p9, %p904_p1  ;;  %p692_p11 = scmp.lt.u32.totalorder %s683_s11, %s989_s6 }
  0x70   : > { %p691_p6 = por %p690_p13, %p689_p5 }
  0x71   : > { %p687_p4 = pneg %p686_p7 }
  0x72   : > { %p693_p3 = por %p692_p11, %p691_p6 }
  0x74   : > { %p694_p8 = pnand %p693_p3, %p687_p4 }
  0x76   : > { %697 = shalt.err (!%p694_p8)
}
  0x77   : > { %s698_s28 = scalar_lea.vmem %s240_s10, 128  ;;  %s792_s30 = smov [#allocation8]  }
  0x78   : > { %p699_p12 = scmp.ne.s32.totalorder %s240_s10, %s698_s28  ;;  %s703_s9 = sshll.u32 %s792_s30, 4  ;;  %s704_s9 = int_to_ptr.vmem [resolvable:$false] %s703_s9 }
  0x79   : > { %s705_s17 = scalar_lea.vmem %s704_s9, 256  ;;  %p706_p9 = scmp.lt.s32.totalorder %s240_s10, %s704_s9 }
  0x7a   : > { %p701_p10 = pnand %p699_p12, %p904_p1  ;;  %p707_p7 = scmp.lt.s32.totalorder %s705_s17, %s698_s28 }
  0x7c   : > { %p702_p0 = pneg %p701_p10  ;;  %p708_p2 = por %p707_p7, %p706_p9 }
  0x7e   : > { %p709_p5 = pnand %p708_p2, %p702_p0 }
  0x80   : > { %712 = shalt.err (!%p709_p5)
}
  0x81   : > { %p1108_p13 = scmp.ne.s32.totalorder %s1101_s5, 0  ;;  %p1109_p4 = scmp.ne.s32.totalorder %s1105_s8, 0 }
  0x82   : > { %s1013_s14 = sand.u32 (!%p1109_p4), 1, %s779_s16   ;;  %p1110_p1 = scmp.ne.s32.totalorder (!%p1109_p4), %s1098_s25, 0 }
  0x83   : > { %550 = dma.hbm_to_vmem [thread:$0]  (!%p1108_p13), %s989_s6, 128, %s240_s10, %s229_s20  }
  0x84   : > { %248 = sbr.rel (%p1109_p4) target bundleno = 566 (0x236), region = 36  ;;  %s1016_s13 = sshll.u32 (!%p1109_p4), %s1013_s14, 3 }
  0x85   : > { %s251_s23 = scalar_lea.sflag (!%p1109_p4), [#allocation3], %s1013_s14  ;;  %s254_s7 = scalar_lea.vmem (!%p1109_p4), [#allocation2], %s1016_s13 }
  0x8b   : > { %758 = dma.done.wait (%p1110_p1), %s251_s23, 128  }
  0x8c   : > { %760 = vsyncadd (%p1110_p1), %s251_s23, 4294967168  ;;  %s259_s5 = sand.u32 1, %s842_s19   ;;  %s263_s6 = scalar_lea.vmem [#allocation5], %s1016_s13 }
  0x8d   : > { %s260_s8 = scalar_lea.sflag [#allocation6], %s259_s5 }
  0x8e   : > { %762 = dma.done.wait (%p1110_p1), %s260_s8, 256  }
  0x8f   : > { %764 = vsyncadd (%p1110_p1), %s260_s8, 4294967040  ;;  %s272_s10 = scalar_lea.vmem [#allocation7], %s1016_s13  ;;  %s278_s20 = scalar_lea.sflag [#allocation9], %s1013_s14 }
  0x90   : > { %s281_s11 = scalar_lea.vmem [#allocation8], %s1016_s13 }
  0x91   : > { %766 = dma.done.wait (%p1110_p1), %s278_s20, 128  }
  0x92   : > { %768 = vsyncadd (%p1110_p1), %s278_s20, 4294967168  ;;  %v321_v0 = vld [vmem:[%s254_s7] sm:$0xff]  ;;  %s793_s1 = smov 2   ;;  %s794_s12 = smov 126   ;;  %v342_v5 = vld [vmem:[%s263_s6] sm:$0xff]  ;;  %vm332_vm0 = vcmask 1031168  }
  0x93   : > { %323 = vrot.lane.b32.xlu0 %v321_v0, %s793_s1  ;;  %v341_v4 = vld [vmem:[%s272_s10] sm:$0xff]  ;;  %v345_v8 = vld [vmem:[%s281_s11] sm:$0xff]  ;;  %s525_s25 = sshll.u32 %s842_s19, 7  ;;  %s320_s22 = scalar_lea.vmem [#allocation10], %s1016_s13 }
  0x94   : > { %v343_v6 = vsub.f32 %v341_v4, %v342_v5  ;;  %s371_s24 = sshll.u32 %s320_s22, 4  ;;  %s1042_s30 = scalar_lea.hbm %s1089_s4, %s525_s25  ;;  %s1044_s24 = int_to_ptr.vmem [resolvable:$true] %s371_s24 }
  0x95   : > { %s358_s9 = scalar_lea.sflag [#allocation4], %s1013_s14  ;;  %s713_s17 = scalar_lea.vmem %s1044_s24, 128 }
  0x96   : > { %v344_v7 = vand.u32 2147483647, %v343_v6  ;;  %p714_p2 = scmp.ne.s32.totalorder %s1044_s24, %s713_s17  ;;  %p1111_p6 = scmp.ne.s32.totalorder %s1099_s26, 0 }
  0x97   : > { %s795_s19 = smov [#allocation10]  }
  0x98   : > { %v346_v11 = vmul.f32 %v345_v8, %v344_v7  ;;  %p715_p11 = pnand %p714_p2, %p1111_p6  ;;  %s717_s13 = sshll.u32 %s795_s19, 4  ;;  %s718_s13 = int_to_ptr.vmem [resolvable:$false] %s717_s13 }
  0x99   : > { %s719_s23 = scalar_lea.vmem %s718_s13, 256  ;;  %p720_p8 = scmp.lt.s32.totalorder %s1044_s24, %s718_s13 }
  0x9a   : > { %p716_p3 = pneg %p715_p11  ;;  %p721_p12 = scmp.lt.s32.totalorder %s719_s23, %s713_s17 }
  0x9c   : > { %p722_p10 = por %p721_p12, %p720_p8 }
  0x9e   : > { %p723_p0 = pnand %p722_p10, %p716_p3 }
 0x105   : > { %v324_v1 = vpop.permute.xlu0 %323 }
 0x106   : > { %v326_v2 = vsub.f32 %v321_v0, %v324_v1 }
 0x108   : > { %v327_v3 = vand.u32 2147483647, %v326_v2 }
 0x10a   : > { %329 = vrot.lane.b32.xlu0 %v327_v3, %s794_s12 }
 0x17c   : > { %v330_v9 = vpop.permute.xlu0 %329 }
 0x17d   : > { %v333_v10 = vsel %vm332_vm0, %v330_v9, 0.0 }
 0x17e   : > { %334 = vadd.xlane.f32.xlu1 %v333_v10 }
 0x182   : > { %347 = vadd.xlane.f32.xlu1 %v346_v11 }
 0x20b   : > { %v335_v12 = vpop.xlane.xlu1 %334 }
 0x20c   : > { %v336_v13 = vmul.f32 0.007936508, %v335_v12 }
 0x20e   : > { %591 = vrcp.f32 %v336_v13  ;;  %vm337_vm1 = vcmp.gt.f32.partialorder %v336_v13, 0.0 }
 0x20f   : > { %v348_v14 = vpop.xlane.xlu1 %347 }
 0x218   : > { %v592_v15 = vpop.eup %591 }
 0x219   : > { %v340_v16 = vsel %vm337_vm1, %v592_v15, 0.0 }
 0x21a   : > { %v349_v17 = vmul.f32 %v348_v14, %v340_v16 }
 0x21c   : > { %v350_v18 = vrot.slane %v349_v17, 4 }
 0x21e   : > { %v351_v19 = vadd.f32 %v350_v18, %v349_v17 }
 0x220   : > { %v352_v20 = vrot.slane %v351_v19, 2 }
 0x222   : > { %v353_v21 = vadd.f32 %v352_v20, %v351_v19 }
 0x224   : > { %v354_v22 = vrot.slane %v353_v21, 1 }
 0x226   : > { %v355_v23 = vadd.f32 %v354_v22, %v353_v21 }
 0x228   : > { %356 = vst [vmem:[%s320_s22] sm:$0xff] %v355_v23 }
 0x229   : > { %726 = shalt.err (!%p723_p0)
}
 0x22a   : > { %s727_s14 = scalar_lea.hbm %s1042_s30, 128  ;;  %s731_s8 = scalar_lea.hbm %s1089_s4, 384 }
 0x22b   : > { %p728_p9 = scmp.ne.s32.totalorder %s1042_s30, %s727_s14  ;;  %p732_p13 = scmp.lt.u32.totalorder %s1042_s30, %s1089_s4 }
 0x22c   : > { %p733_p4 = scmp.lt.u32.totalorder %s731_s8, %s727_s14  ;;  %p735_p2 = scmp.lt.u32.totalorder %s727_s14, %s1042_s30 }
 0x22d   : > { %p729_p7 = pnand %p728_p9, %p1111_p6 }
 0x22e   : > { %p734_p1 = por %p733_p4, %p732_p13 }
 0x22f   : > { %p730_p5 = pneg %p729_p7 }
 0x230   : > { %p736_p11 = por %p735_p2, %p734_p1 }
 0x232   : > { %p737_p3 = pnand %p736_p11, %p730_p5 }
 0x234   : > { %740 = shalt.err (!%p737_p3)
}
 0x235   : > { %536 = dma.vmem_to_hbm [thread:$0]  (%p1111_p6), %s1044_s24, 128, %s1042_s30, %s358_s9  }
 0x236 PF: > { %p556_p8 = scmp.ge.s32.totalorder %s787_s18, 2  ;;  %s383_s20 = sand.u32 1, %s775_s15  }
 0x237   : > { %p1112_p12 = scmp.ne.s32.totalorder %s1100_s27, 0  ;;  %s384_s11 = scalar_lea.sflag [#allocation4], %s383_s20 }
 0x239   : > { %p552_p10 = pnand %p556_p8, %p1112_p12 }
 0x23b   : > { %770 = dma.done.wait (!%p552_p10), %s384_s11, 128  }
 0x23c   : > { %772 = vsyncadd (!%p552_p10), %s384_s11, 4294967168  ;;  %s1113_s1 = sld [smem:[#allocation15_spill]]  ;;  %s1114_s17 = sld [smem:[#allocation16_spill]] }
 0x23d   : > { %p23_p0 = scmp.ge.s32.totalorder %s846_s21, 5   ;;  %s1115_s15 = smov %s779_s16 }
 0x23e   : > { %s1117_s18 = smov %s846_s21 }
 0x23f   :  { %25 = sbr.rel (!%p23_p0) target bundleno = 11 (0xb), region = 118 }
 0x242   : > { %s1116_s16 = smov %s1113_s1 }
 0x246   :  { %389 = vsyncpa [#allocation3], 1 }
 0x247   :  { %391 = vsyncpa [#allocation3 + $0x1], 1 }
 0x248   :  { %392 = vsyncpa [#allocation6], 1 }
 0x249   :  { %394 = vsyncpa [#allocation6 + $0x1], 1 }
 0x24a   :  { %395 = vsyncpa [#allocation9], 1 }
 0x24b   :  { %397 = vsyncpa [#allocation9 + $0x1], 1 }
 0x24c   :  { %398 = vsyncpa [#allocation4], 1 }
 0x24d   :  { %400 = vsyncpa [#allocation4 + $0x1], 1 }

</bundles_post_ra>
